<compile_context>
chip_gen: v6e
topology: v6e:2x2x1
jax: 0.10.0
libtpu: 0.0.40
codegen_flags: <defaults>
</compile_context>

<pallas_src>
import jax
import jax.numpy as jnp
import numpy as np
from jax import lax
from jax.experimental import pallas as pl
from jax.experimental.pallas import tpu as pltpu

_EPS = 1e-5


def make_resblock_kernel(B, T, Cin, Cout, K, dilation):
    N = B * T
    inv_n = 1.0 / float(N)
    pow2_T = (T & (T - 1)) == 0

    def kernel(x_ref, w1_ref, b1_ref, a1_ref, g1_ref, be1_ref,
               wdw_ref, a2_ref, g2_ref, be2_ref, wpw_ref, o_ref):
        x = x_ref[...].astype(jnp.float32)          # (Cin, N): native-dtype DMA, f32 math
        w1 = w1_ref[...]                            # (Cout, Cin)
        wdw = wdw_ref[...]                          # (Cout, K)
        wpw = wpw_ref[...]                          # (Cin, Cout)
        a1 = a1_ref[0, 0]                           # PReLU slopes (single-parameter)
        a2 = a2_ref[0, 0]

        # ---- 1x1 conv (Cin -> Cout) + bias + PReLU --------------------------
        # Contraction dim is tiny (Cin): VPU broadcast-FMAs, no MXU push/drain.
        h = b1_ref[...] + w1[:, 0:1] * x[0:1, :]                       # (Cout, N)
        for c in range(1, Cin):                                        # static, tiny
            h = h + w1[:, c:c + 1] * x[c:c + 1, :]
        h = jnp.where(h >= 0.0, h, a1 * h)

        # ---- BatchNorm1d #1 (training: biased batch stats over B*T lanes) ---
        mean1 = jnp.sum(h, axis=1, keepdims=True) * inv_n              # (Cout, 1)
        d1 = h - mean1
        var1 = jnp.sum(d1 * d1, axis=1, keepdims=True) * inv_n
        h = d1 * (g1_ref[...] * lax.rsqrt(var1 + _EPS)) + be1_ref[...]

        # ---- causal depthwise dilated conv (Chomp'd right padding) ----------
        # B length-T sequences are packed along the lane axis; each tap is an
        # in-register lane roll, masked so a sequence never reads its left
        # neighbour (i.e. causal zero padding per sequence).
        lane = lax.broadcasted_iota(jnp.int32, (Cout, N), 1)
        local = jnp.bitwise_and(lane, T - 1) if pow2_T else lane % T
        acc = h * wdw[:, K - 1:K]                   # tap with zero shift
        for k in range(K - 1):
            s = dilation * (K - 1 - k)              # static causal shift, 0 < s < T
            shifted = pltpu.roll(h, shift=s, axis=1)        # shifted[t] = h[t - s]
            shifted = jnp.where(local >= s, shifted, 0.0)
            acc = acc + wdw[:, k:k + 1] * shifted
        h2 = jnp.where(acc >= 0.0, acc, a2 * acc)   # PReLU

        # ---- BatchNorm1d #2 ---------------------------------------------------
        mean2 = jnp.sum(h2, axis=1, keepdims=True) * inv_n
        d2 = h2 - mean2
        var2 = jnp.sum(d2 * d2, axis=1, keepdims=True) * inv_n
        h2 = d2 * (g2_ref[...] * lax.rsqrt(var2 + _EPS)) + be2_ref[...]

        # ---- 1x1 pointwise conv (Cout -> Cin, no bias) + residual ------------
        out = x                                      # x fully read before the aliased store
        for co in range(Cout):                                         # static, tiny
            out = out + wpw[:, co:co + 1] * h2[co:co + 1, :]
        o_ref[...] = out.astype(o_ref.dtype)

    return kernel


def _vmem_limit_bytes(resident_bytes):
    """Footprint-derived scoped-VMEM limit (None => keep the compiler default).

    Defaults are 16 MiB (v5e) / 32 MiB (v6e, v7x); only raise the limit when the
    resident footprint (x2 headroom for compiler scratch / future buffering)
    actually needs more.
    """
    needed = 2 * int(resident_bytes) + (1 << 20)
    return None if needed <= 16 * 1024 * 1024 else needed


def resblock_forward(x_nct, params, K, dilation):
    """x_nct: (B, Cin, T) exactly like the PyTorch module; returns (B, Cin, T)."""
    B, Cin, T = x_nct.shape
    Cout, _ = params["w1"].shape
    P = dilation * (K - 1)
    assert P < T, "causal receptive field must fit in T"
    N = B * T

    # Lane-dense flat layout: channels on sublanes, B*T on lanes.  The tiny
    # wrapper-side transpose is layout plumbing (a few KB) that lets passes 1/3
    # and both BatchNorm reductions run over all batches at once with no
    # sublane padding of Cin=4 slices.
    x_flat = jnp.transpose(x_nct, (1, 0, 2)).reshape(Cin, N)

    kernel = make_resblock_kernel(B, T, Cin, Cout, K, dilation)
    vmem = pl.BlockSpec(memory_space=pltpu.MemorySpace.VMEM)

    args = (x_flat, params["w1"], params["b1"], params["a1"], params["g1"],
            params["be1"], params["wdw"], params["a2"], params["g2"],
            params["be2"], params["wpw"])
    resident = sum(int(a.size) * a.dtype.itemsize for a in args)
    resident += int(x_flat.size) * x_flat.dtype.itemsize   # output (aliased, counted anyway)

    out_flat = pl.pallas_call(
        kernel,
        out_shape=jax.ShapeDtypeStruct((Cin, N), x_nct.dtype),
        in_specs=[vmem] * len(args),
        out_specs=vmem,
        input_output_aliases={0: 0},   # residual input fully consumed before output store
        compiler_params=pltpu.CompilerParams(
            vmem_limit_bytes=_vmem_limit_bytes(resident)),
    )(*args)

    return jnp.transpose(out_flat.reshape(Cin, B, T), (1, 0, 2))


def ref_forward(x_nct, params, K, dilation):
    """Pure-JAX reference (independent padding-based formulation), NCL layout."""
    B, _, T = x_nct.shape
    h = jnp.einsum("oc,bct->bot", params["w1"], x_nct) + params["b1"][None]
    a1 = params["a1"][0, 0]
    h = jnp.where(h >= 0, h, a1 * h)
    mean = jnp.mean(h, axis=(0, 2), keepdims=True)
    var = jnp.mean((h - mean) ** 2, axis=(0, 2), keepdims=True)
    h = (h - mean) / jnp.sqrt(var + _EPS) * params["g1"][None] + params["be1"][None]
    P = dilation * (K - 1)
    hp = jnp.pad(h, ((0, 0), (0, 0), (P, 0)))
    dw = sum(params["wdw"][:, k][None, :, None] * hp[:, :, k * dilation:k * dilation + T]
             for k in range(K))
    a2 = params["a2"][0, 0]
    h2 = jnp.where(dw >= 0, dw, a2 * dw)
    mean2 = jnp.mean(h2, axis=(0, 2), keepdims=True)
    var2 = jnp.mean((h2 - mean2) ** 2, axis=(0, 2), keepdims=True)
    h2 = (h2 - mean2) / jnp.sqrt(var2 + _EPS) * params["g2"][None] + params["be2"][None]
    out = jnp.einsum("oc,bct->bot", params["wpw"], h2)
    return out + x_nct


if __name__ == "__main__":
    B, Cin, Cout, T = 2, 4, 8, 128     # T multiple of 128 -> lane-dense kernel
    K, dilation = 3, 2

    key = jax.random.PRNGKey(0)
    ks = jax.random.split(key, 10)
    x = jax.random.normal(ks[0], (B, Cin, T), jnp.float32)

    params = dict(
        # Conv1d(Cin->Cout, k=1): weight (Cout, Cin, 1) -> (Cout, Cin), bias (Cout,) -> (Cout, 1)
        w1=0.3 * jax.random.normal(ks[1], (Cout, Cin), jnp.float32),
        b1=0.1 * jax.random.normal(ks[2], (Cout, 1), jnp.float32),
        a1=jnp.full((1, 1), 0.25, jnp.float32),              # PReLU default init
        g1=1.0 + 0.1 * jax.random.normal(ks[3], (Cout, 1), jnp.float32),
        be1=0.1 * jax.random.normal(ks[4], (Cout, 1), jnp.float32),
        # depthwise Conv1d weight (Cout, 1, K) -> (Cout, K)
        wdw=0.3 * jax.random.normal(ks[5], (Cout, K), jnp.float32),
        a2=jnp.full((1, 1), 0.25, jnp.float32),
        g2=1.0 + 0.1 * jax.random.normal(ks[6], (Cout, 1), jnp.float32),
        be2=0.1 * jax.random.normal(ks[7], (Cout, 1), jnp.float32),
        # pointwise Conv1d(Cout->Cin, k=1, no bias): weight (Cin, Cout, 1) -> (Cin, Cout)
        wpw=0.3 * jax.random.normal(ks[8], (Cin, Cout), jnp.float32),
    )

    out = jax.block_until_ready(resblock_forward(x, params, K, dilation))
    ref = jax.block_until_ready(ref_forward(x, params, K, dilation))

    assert out.shape == (B, Cin, T)
    np.testing.assert_allclose(np.asarray(out), np.asarray(ref), atol=1e-4, rtol=1e-4)
    print("KERNEL_OK")
</pallas_src>

<mosaic_0001>
module attributes {stable_mosaic.version = 11 : i64} {
  func.func @kernel(%arg0: memref<4x256xf32, #tpu.memory_space<vmem>>, %arg1: memref<8x4xf32, #tpu.memory_space<vmem>>, %arg2: memref<8x1xf32, #tpu.memory_space<vmem>>, %arg3: memref<1x1xf32, #tpu.memory_space<vmem>>, %arg4: memref<8x1xf32, #tpu.memory_space<vmem>>, %arg5: memref<8x1xf32, #tpu.memory_space<vmem>>, %arg6: memref<8x3xf32, #tpu.memory_space<vmem>>, %arg7: memref<1x1xf32, #tpu.memory_space<vmem>>, %arg8: memref<8x1xf32, #tpu.memory_space<vmem>>, %arg9: memref<8x1xf32, #tpu.memory_space<vmem>>, %arg10: memref<4x8xf32, #tpu.memory_space<vmem>>, %arg11: memref<4x256xf32, #tpu.memory_space<vmem>>) attributes {dimension_semantics = [], scalar_prefetch = 0 : i64, scratch_operands = 0 : i64, tpu.core_type = #tpu.core_type<tc>} {
    %c0 = arith.constant 0 : index
    %c0_0 = arith.constant 0 : index
    %0 = vector.load %arg0[%c0, %c0_0] : memref<4x256xf32, #tpu.memory_space<vmem>>, vector<4x256xf32>
    %c0_1 = arith.constant 0 : index
    %c0_2 = arith.constant 0 : index
    %1 = vector.load %arg1[%c0_1, %c0_2] : memref<8x4xf32, #tpu.memory_space<vmem>>, vector<8x4xf32>
    %c0_3 = arith.constant 0 : index
    %c0_4 = arith.constant 0 : index
    %2 = vector.load %arg6[%c0_3, %c0_4] : memref<8x3xf32, #tpu.memory_space<vmem>>, vector<8x3xf32>
    %c0_5 = arith.constant 0 : index
    %c0_6 = arith.constant 0 : index
    %3 = vector.load %arg10[%c0_5, %c0_6] : memref<4x8xf32, #tpu.memory_space<vmem>>, vector<4x8xf32>
    %c0_7 = arith.constant 0 : index
    %c0_8 = arith.constant 0 : index
    %4 = vector.load %arg3[%c0_7, %c0_8] : memref<1x1xf32, #tpu.memory_space<vmem>>, vector<1x1xf32>
    %5 = vector.extract %4[0, 0] : f32 from vector<1x1xf32>
    %c0_9 = arith.constant 0 : index
    %c0_10 = arith.constant 0 : index
    %6 = vector.load %arg7[%c0_9, %c0_10] : memref<1x1xf32, #tpu.memory_space<vmem>>, vector<1x1xf32>
    %7 = vector.extract %6[0, 0] : f32 from vector<1x1xf32>
    %c0_11 = arith.constant 0 : index
    %c0_12 = arith.constant 0 : index
    %8 = vector.load %arg2[%c0_11, %c0_12] : memref<8x1xf32, #tpu.memory_space<vmem>>, vector<8x1xf32>
    %9 = vector.extract_strided_slice %1 {offsets = [0, 0], sizes = [8, 1], strides = [1, 1]} : vector<8x4xf32> to vector<8x1xf32>
    %10 = vector.extract_strided_slice %0 {offsets = [0, 0], sizes = [1, 256], strides = [1, 1]} : vector<4x256xf32> to vector<1x256xf32>
    %11 = vector.broadcast %9 : vector<8x1xf32> to vector<8x256xf32>
    %12 = vector.broadcast %10 : vector<1x256xf32> to vector<8x256xf32>
    %13 = arith.mulf %11, %12 : vector<8x256xf32>
    %14 = vector.broadcast %8 : vector<8x1xf32> to vector<8x256xf32>
    %15 = arith.addf %14, %13 : vector<8x256xf32>
    %16 = vector.extract_strided_slice %1 {offsets = [0, 1], sizes = [8, 1], strides = [1, 1]} : vector<8x4xf32> to vector<8x1xf32>
    %17 = vector.extract_strided_slice %0 {offsets = [1, 0], sizes = [1, 256], strides = [1, 1]} : vector<4x256xf32> to vector<1x256xf32>
    %18 = vector.broadcast %16 : vector<8x1xf32> to vector<8x256xf32>
    %19 = vector.broadcast %17 : vector<1x256xf32> to vector<8x256xf32>
    %20 = arith.mulf %18, %19 : vector<8x256xf32>
    %21 = arith.addf %15, %20 : vector<8x256xf32>
    %22 = vector.extract_strided_slice %1 {offsets = [0, 2], sizes = [8, 1], strides = [1, 1]} : vector<8x4xf32> to vector<8x1xf32>
    %23 = vector.extract_strided_slice %0 {offsets = [2, 0], sizes = [1, 256], strides = [1, 1]} : vector<4x256xf32> to vector<1x256xf32>
    %24 = vector.broadcast %22 : vector<8x1xf32> to vector<8x256xf32>
    %25 = vector.broadcast %23 : vector<1x256xf32> to vector<8x256xf32>
    %26 = arith.mulf %24, %25 : vector<8x256xf32>
    %27 = arith.addf %21, %26 : vector<8x256xf32>
    %28 = vector.extract_strided_slice %1 {offsets = [0, 3], sizes = [8, 1], strides = [1, 1]} : vector<8x4xf32> to vector<8x1xf32>
    %29 = vector.extract_strided_slice %0 {offsets = [3, 0], sizes = [1, 256], strides = [1, 1]} : vector<4x256xf32> to vector<1x256xf32>
    %30 = vector.broadcast %28 : vector<8x1xf32> to vector<8x256xf32>
    %31 = vector.broadcast %29 : vector<1x256xf32> to vector<8x256xf32>
    %32 = arith.mulf %30, %31 : vector<8x256xf32>
    %33 = arith.addf %27, %32 : vector<8x256xf32>
    %cst = arith.constant 0.000000e+00 : f32
    %34 = vector.broadcast %cst : f32 to vector<8x256xf32>
    %35 = arith.cmpf oge, %33, %34 : vector<8x256xf32>
    %36 = vector.broadcast %5 : f32 to vector<8x256xf32>
    %37 = arith.mulf %36, %33 : vector<8x256xf32>
    %38 = arith.select %35, %33, %37 : vector<8x256xi1>, vector<8x256xf32>
    %cst_13 = arith.constant dense<0.000000e+00> : vector<8xf32>
    %39 = vector.multi_reduction <add>, %38, %cst_13 [1] : vector<8x256xf32> to vector<8xf32>
    %40 = vector.shape_cast %39 : vector<8xf32> to vector<8x1xf32>
    %cst_14 = arith.constant 3.906250e-03 : f32
    %41 = vector.broadcast %cst_14 : f32 to vector<8x1xf32>
    %42 = arith.mulf %40, %41 : vector<8x1xf32>
    %43 = vector.broadcast %42 : vector<8x1xf32> to vector<8x256xf32>
    %44 = arith.subf %38, %43 : vector<8x256xf32>
    %45 = arith.mulf %44, %44 : vector<8x256xf32>
    %cst_15 = arith.constant dense<0.000000e+00> : vector<8xf32>
    %46 = vector.multi_reduction <add>, %45, %cst_15 [1] : vector<8x256xf32> to vector<8xf32>
    %47 = vector.shape_cast %46 : vector<8xf32> to vector<8x1xf32>
    %cst_16 = arith.constant 3.906250e-03 : f32
    %48 = vector.broadcast %cst_16 : f32 to vector<8x1xf32>
    %49 = arith.mulf %47, %48 : vector<8x1xf32>
    %c0_17 = arith.constant 0 : index
    %c0_18 = arith.constant 0 : index
    %50 = vector.load %arg4[%c0_17, %c0_18] : memref<8x1xf32, #tpu.memory_space<vmem>>, vector<8x1xf32>
    %cst_19 = arith.constant 9.99999974E-6 : f32
    %51 = vector.broadcast %cst_19 : f32 to vector<8x1xf32>
    %52 = arith.addf %49, %51 : vector<8x1xf32>
    %53 = math.rsqrt %52 : vector<8x1xf32>
    %54 = arith.mulf %50, %53 : vector<8x1xf32>
    %55 = vector.broadcast %54 : vector<8x1xf32> to vector<8x256xf32>
    %56 = arith.mulf %44, %55 : vector<8x256xf32>
    %c0_20 = arith.constant 0 : index
    %c0_21 = arith.constant 0 : index
    %57 = vector.load %arg5[%c0_20, %c0_21] : memref<8x1xf32, #tpu.memory_space<vmem>>, vector<8x1xf32>
    %58 = vector.broadcast %57 : vector<8x1xf32> to vector<8x256xf32>
    %59 = arith.addf %56, %58 : vector<8x256xf32>
    %60 = tpu.iota {dimensions = array<i32: 1>} : vector<8x256xi32>
    %c127_i32 = arith.constant 127 : i32
    %61 = vector.broadcast %c127_i32 : i32 to vector<8x256xi32>
    %62 = arith.andi %60, %61 : vector<8x256xi32>
    %63 = vector.extract_strided_slice %2 {offsets = [0, 2], sizes = [8, 1], strides = [1, 1]} : vector<8x3xf32> to vector<8x1xf32>
    %64 = vector.broadcast %63 : vector<8x1xf32> to vector<8x256xf32>
    %65 = arith.mulf %59, %64 : vector<8x256xf32>
    %c4_i32 = arith.constant 4 : i32
    %66 = tpu.dynamic_rotate %59 by %c4_i32 dim 1 : vector<8x256xf32>, i32 -> vector<8x256xf32>
    %c4_i32_22 = arith.constant 4 : i32
    %67 = vector.broadcast %c4_i32_22 : i32 to vector<8x256xi32>
    %68 = arith.cmpi sge, %62, %67 : vector<8x256xi32>
    %cst_23 = arith.constant 0.000000e+00 : f32
    %69 = vector.broadcast %cst_23 : f32 to vector<8x256xf32>
    %70 = arith.select %68, %66, %69 : vector<8x256xi1>, vector<8x256xf32>
    %71 = vector.extract_strided_slice %2 {offsets = [0, 0], sizes = [8, 1], strides = [1, 1]} : vector<8x3xf32> to vector<8x1xf32>
    %72 = vector.broadcast %71 : vector<8x1xf32> to vector<8x256xf32>
    %73 = arith.mulf %72, %70 : vector<8x256xf32>
    %74 = arith.addf %65, %73 : vector<8x256xf32>
    %c2_i32 = arith.constant 2 : i32
    %75 = tpu.dynamic_rotate %59 by %c2_i32 dim 1 : vector<8x256xf32>, i32 -> vector<8x256xf32>
    %c2_i32_24 = arith.constant 2 : i32
    %76 = vector.broadcast %c2_i32_24 : i32 to vector<8x256xi32>
    %77 = arith.cmpi sge, %62, %76 : vector<8x256xi32>
    %cst_25 = arith.constant 0.000000e+00 : f32
    %78 = vector.broadcast %cst_25 : f32 to vector<8x256xf32>
    %79 = arith.select %77, %75, %78 : vector<8x256xi1>, vector<8x256xf32>
    %80 = vector.extract_strided_slice %2 {offsets = [0, 1], sizes = [8, 1], strides = [1, 1]} : vector<8x3xf32> to vector<8x1xf32>
    %81 = vector.broadcast %80 : vector<8x1xf32> to vector<8x256xf32>
    %82 = arith.mulf %81, %79 : vector<8x256xf32>
    %83 = arith.addf %74, %82 : vector<8x256xf32>
    %cst_26 = arith.constant 0.000000e+00 : f32
    %84 = vector.broadcast %cst_26 : f32 to vector<8x256xf32>
    %85 = arith.cmpf oge, %83, %84 : vector<8x256xf32>
    %86 = vector.broadcast %7 : f32 to vector<8x256xf32>
    %87 = arith.mulf %86, %83 : vector<8x256xf32>
    %88 = arith.select %85, %83, %87 : vector<8x256xi1>, vector<8x256xf32>
    %cst_27 = arith.constant dense<0.000000e+00> : vector<8xf32>
    %89 = vector.multi_reduction <add>, %88, %cst_27 [1] : vector<8x256xf32> to vector<8xf32>
    %90 = vector.shape_cast %89 : vector<8xf32> to vector<8x1xf32>
    %cst_28 = arith.constant 3.906250e-03 : f32
    %91 = vector.broadcast %cst_28 : f32 to vector<8x1xf32>
    %92 = arith.mulf %90, %91 : vector<8x1xf32>
    %93 = vector.broadcast %92 : vector<8x1xf32> to vector<8x256xf32>
    %94 = arith.subf %88, %93 : vector<8x256xf32>
    %95 = arith.mulf %94, %94 : vector<8x256xf32>
    %cst_29 = arith.constant dense<0.000000e+00> : vector<8xf32>
    %96 = vector.multi_reduction <add>, %95, %cst_29 [1] : vector<8x256xf32> to vector<8xf32>
    %97 = vector.shape_cast %96 : vector<8xf32> to vector<8x1xf32>
    %cst_30 = arith.constant 3.906250e-03 : f32
    %98 = vector.broadcast %cst_30 : f32 to vector<8x1xf32>
    %99 = arith.mulf %97, %98 : vector<8x1xf32>
    %c0_31 = arith.constant 0 : index
    %c0_32 = arith.constant 0 : index
    %100 = vector.load %arg8[%c0_31, %c0_32] : memref<8x1xf32, #tpu.memory_space<vmem>>, vector<8x1xf32>
    %cst_33 = arith.constant 9.99999974E-6 : f32
    %101 = vector.broadcast %cst_33 : f32 to vector<8x1xf32>
    %102 = arith.addf %99, %101 : vector<8x1xf32>
    %103 = math.rsqrt %102 : vector<8x1xf32>
    %104 = arith.mulf %100, %103 : vector<8x1xf32>
    %105 = vector.broadcast %104 : vector<8x1xf32> to vector<8x256xf32>
    %106 = arith.mulf %94, %105 : vector<8x256xf32>
    %c0_34 = arith.constant 0 : index
    %c0_35 = arith.constant 0 : index
    %107 = vector.load %arg9[%c0_34, %c0_35] : memref<8x1xf32, #tpu.memory_space<vmem>>, vector<8x1xf32>
    %108 = vector.broadcast %107 : vector<8x1xf32> to vector<8x256xf32>
    %109 = arith.addf %106, %108 : vector<8x256xf32>
    %110 = vector.extract_strided_slice %3 {offsets = [0, 0], sizes = [4, 1], strides = [1, 1]} : vector<4x8xf32> to vector<4x1xf32>
    %111 = vector.extract_strided_slice %109 {offsets = [0, 0], sizes = [1, 256], strides = [1, 1]} : vector<8x256xf32> to vector<1x256xf32>
    %112 = vector.broadcast %110 : vector<4x1xf32> to vector<4x256xf32>
    %113 = vector.broadcast %111 : vector<1x256xf32> to vector<4x256xf32>
    %114 = arith.mulf %112, %113 : vector<4x256xf32>
    %115 = arith.addf %0, %114 : vector<4x256xf32>
    %116 = vector.extract_strided_slice %3 {offsets = [0, 1], sizes = [4, 1], strides = [1, 1]} : vector<4x8xf32> to vector<4x1xf32>
    %117 = vector.extract_strided_slice %109 {offsets = [1, 0], sizes = [1, 256], strides = [1, 1]} : vector<8x256xf32> to vector<1x256xf32>
    %118 = vector.broadcast %116 : vector<4x1xf32> to vector<4x256xf32>
    %119 = vector.broadcast %117 : vector<1x256xf32> to vector<4x256xf32>
    %120 = arith.mulf %118, %119 : vector<4x256xf32>
    %121 = arith.addf %115, %120 : vector<4x256xf32>
    %122 = vector.extract_strided_slice %3 {offsets = [0, 2], sizes = [4, 1], strides = [1, 1]} : vector<4x8xf32> to vector<4x1xf32>
    %123 = vector.extract_strided_slice %109 {offsets = [2, 0], sizes = [1, 256], strides = [1, 1]} : vector<8x256xf32> to vector<1x256xf32>
    %124 = vector.broadcast %122 : vector<4x1xf32> to vector<4x256xf32>
    %125 = vector.broadcast %123 : vector<1x256xf32> to vector<4x256xf32>
    %126 = arith.mulf %124, %125 : vector<4x256xf32>
    %127 = arith.addf %121, %126 : vector<4x256xf32>
    %128 = vector.extract_strided_slice %3 {offsets = [0, 3], sizes = [4, 1], strides = [1, 1]} : vector<4x8xf32> to vector<4x1xf32>
    %129 = vector.extract_strided_slice %109 {offsets = [3, 0], sizes = [1, 256], strides = [1, 1]} : vector<8x256xf32> to vector<1x256xf32>
    %130 = vector.broadcast %128 : vector<4x1xf32> to vector<4x256xf32>
    %131 = vector.broadcast %129 : vector<1x256xf32> to vector<4x256xf32>
    %132 = arith.mulf %130, %131 : vector<4x256xf32>
    %133 = arith.addf %127, %132 : vector<4x256xf32>
    %134 = vector.extract_strided_slice %3 {offsets = [0, 4], sizes = [4, 1], strides = [1, 1]} : vector<4x8xf32> to vector<4x1xf32>
    %135 = vector.extract_strided_slice %109 {offsets = [4, 0], sizes = [1, 256], strides = [1, 1]} : vector<8x256xf32> to vector<1x256xf32>
    %136 = vector.broadcast %134 : vector<4x1xf32> to vector<4x256xf32>
    %137 = vector.broadcast %135 : vector<1x256xf32> to vector<4x256xf32>
    %138 = arith.mulf %136, %137 : vector<4x256xf32>
    %139 = arith.addf %133, %138 : vector<4x256xf32>
    %140 = vector.extract_strided_slice %3 {offsets = [0, 5], sizes = [4, 1], strides = [1, 1]} : vector<4x8xf32> to vector<4x1xf32>
    %141 = vector.extract_strided_slice %109 {offsets = [5, 0], sizes = [1, 256], strides = [1, 1]} : vector<8x256xf32> to vector<1x256xf32>
    %142 = vector.broadcast %140 : vector<4x1xf32> to vector<4x256xf32>
    %143 = vector.broadcast %141 : vector<1x256xf32> to vector<4x256xf32>
    %144 = arith.mulf %142, %143 : vector<4x256xf32>
    %145 = arith.addf %139, %144 : vector<4x256xf32>
    %146 = vector.extract_strided_slice %3 {offsets = [0, 6], sizes = [4, 1], strides = [1, 1]} : vector<4x8xf32> to vector<4x1xf32>
    %147 = vector.extract_strided_slice %109 {offsets = [6, 0], sizes = [1, 256], strides = [1, 1]} : vector<8x256xf32> to vector<1x256xf32>
    %148 = vector.broadcast %146 : vector<4x1xf32> to vector<4x256xf32>
    %149 = vector.broadcast %147 : vector<1x256xf32> to vector<4x256xf32>
    %150 = arith.mulf %148, %149 : vector<4x256xf32>
    %151 = arith.addf %145, %150 : vector<4x256xf32>
    %152 = vector.extract_strided_slice %3 {offsets = [0, 7], sizes = [4, 1], strides = [1, 1]} : vector<4x8xf32> to vector<4x1xf32>
    %153 = vector.extract_strided_slice %109 {offsets = [7, 0], sizes = [1, 256], strides = [1, 1]} : vector<8x256xf32> to vector<1x256xf32>
    %154 = vector.broadcast %152 : vector<4x1xf32> to vector<4x256xf32>
    %155 = vector.broadcast %153 : vector<1x256xf32> to vector<4x256xf32>
    %156 = arith.mulf %154, %155 : vector<4x256xf32>
    %157 = arith.addf %151, %156 : vector<4x256xf32>
    %c0_36 = arith.constant 0 : index
    %c0_37 = arith.constant 0 : index
    %158 = vector.load %arg11[%c0_36, %c0_37] : memref<4x256xf32, #tpu.memory_space<vmem>>, vector<4x256xf32>
    tpu.vector_store %arg11[%c0_36, %c0_37], %157 {strides = array<i32>} : memref<4x256xf32, #tpu.memory_space<vmem>>, vector<4x256xf32>,
    return
  }
}

</mosaic_0001>

<bundles_post_ra>
// kernel: tpu_custom_call.1
= control target key start
LH: loop header
LB: loop body
LE: loop exit
PB: predicated region body
PF: predicated region fallthrough
CT: control target
= control target key end

     0   :  { %s733_s0 = inlined_call_operand.hbm [shape: f32[4,256], index: 0, kind: input, shape index: {}, may-alias: {0,11}]   ;;  %s734_s1 = inlined_call_operand.vmem [shape: f32[8,4], index: 1, kind: input, shape index: {}]   ;;  %s735_s2 = inlined_call_operand.vmem [shape: f32[8,1], index: 2, kind: input, shape index: {}]   ;;  %s736_s3 = inlined_call_operand.<no memory space> [shape: f32[1,1], index: 3, kind: input, shape index: {}]   ;;  %s737_s4 = inlined_call_operand.vmem [shape: f32[8,1], index: 4, kind: input, shape index: {}]   ;;  %s738_s5 = inlined_call_operand.vmem [shape: f32[8,1], index: 5, kind: input, shape index: {}]   ;;  %s739_s6 = inlined_call_operand.vmem [shape: f32[8,3], index: 6, kind: input, shape index: {}]   ;;  %s740_s8 = inlined_call_operand.vmem [shape: f32[8,1], index: 8, kind: input, shape index: {}]   ;;  %s741_s9 = inlined_call_operand.vmem [shape: f32[8,1], index: 9, kind: input, shape index: {}]   ;;  %s742_s10 = inlined_call_operand.vmem [shape: f32[4,8], index: 10, kind: input, shape index: {}]   ;;  %s743_s11 = inlined_call_operand.hbm [shape: f32[4,256], index: 11, kind: output, shape index: {}, may-alias: {0,11}]   ;;  %s744_s7 = inlined_call_operand.<no memory space> [shape: f32[1,1], index: 7, kind: input, shape index: {}]  }
   0x1   :  { %v16_v0 = vstv %s736_s3  ;;  %v18_v1 = vstv %s744_s7 }
   0x2   :  { %17 = vst [vmem:[#allocation2] sm:$0x1] %v16_v0  ;;  %19 = vst [vmem:[#allocation3] sm:$0x1] %v18_v1 }
   0x3   :  { %20 = vsyncpa [#allocation5], 0 }
   0x4   :  { %21 = vsyncpa [#allocation6], 0  ;;  %s551_s21 = smov [#allocation4]  }
   0x5   :  { %s28_s22 = sshll.u32 %s551_s21, 4  ;;  %s29_s22 = int_to_ptr.vmem [resolvable:$true] %s28_s22 }
   0x6   :  { %s515_s23 = scalar_lea.vmem %s29_s22, 128  ;;  %p520_p1 = scmp.lt.s32.totalorder %s29_s22, %s29_s22 }
   0x7   :  { %p516_p0 = scmp.ne.s32.totalorder %s29_s22, %s515_s23  ;;  %p521_p2 = scmp.lt.s32.totalorder %s515_s23, %s515_s23 }
   0x9   :  { %p522_p3 = por %p521_p2, %p520_p1 }
   0xb   :  { %p523_p4 = pnand %p522_p3, %p516_p0 }
   0xd   :  { %526 = shalt.err (!%p523_p4)
}
   0xe   :  { %31 = dma.hbm_to_vmem [thread:$0]  %s733_s0, 128, %s29_s22, [#allocation5]  }
   0xf   :  { %547 = dma.done.wait [#allocation5], 128  }
  0x10   :  { %548 = vsyncadd [#allocation5], 4294967168  ;;  %v552_v2 = vmov 0   ;;  %v553_v3 = vmov 1   ;;  %v56_v4 = vld [vmem:[%s734_s1] sm:$0xff]  ;;  %v554_v7 = vmov 2   ;;  %v70_v9 = vlaneseq }
  0x11   :  { %486 = vset.pattern.permute.xlu0 %v552_v2  ;;  %487 = vset.pattern.permute.xlu1 %v553_v3  ;;  %v59_v5 = vld [vmem:[#allocation2] sm:$0x1]  ;;  %v555_v8 = vmov 3   ;;  %v649_v13 = vld [vmem:[#allocation4] sm:$0xff] }
  0x12   :  { %66 = vperm.xlu0 %486, %v56_v4   ;;  %98 = vperm.xlu1 %487, %v56_v4   ;;  %470 = vpush %v59_v5  ;;  %v63_v6 = vld [vmem:[%s735_s2] sm:$0xff]  ;;  %v71_v10 = vshrl.u32 %v70_v9, 7 }
  0x14   :  { %v645_v11 = vsub.s32 0, %v71_v10  ;;  %v647_v12 = vsub.s32 4, %v71_v10  ;;  %v651_v14 = vsub.s32 1, %v71_v10  ;;  %v653_v15 = vsub.s32 5, %v71_v10 }
  0x15   :  { %v655_v16 = vsub.s32 2, %v71_v10  ;;  %v657_v17 = vsub.s32 6, %v71_v10  ;;  %v671_v24 = vsub.s32 3, %v71_v10  ;;  %v673_v25 = vsub.s32 7, %v71_v10 }
  0x16   :  { %92 = vperm.xlu0 %486, %v63_v6   ;;  %488 = vset.pattern.permute.xlu1 %v554_v7  ;;  %v73_v18 = vrot.slane %v649_v13, %v645_v11  ;;  %v77_v19 = vrot.slane %v649_v13, %v647_v12  ;;  %v104_v20 = vrot.slane %v649_v13, %v651_v14 }
  0x17   :  { %124 = vperm.xlu1 %488, %v56_v4   ;;  %v108_v21 = vrot.slane %v649_v13, %v653_v15  ;;  %v130_v22 = vrot.slane %v649_v13, %v655_v16  ;;  %v134_v23 = vrot.slane %v649_v13, %v657_v17  ;;  %v156_v34 = vrot.slane %v649_v13, %v671_v24 }
  0x18   :  { %v83_v26 = vrot.slane %v73_v18, %v645_v11  ;;  %v87_v27 = vrot.slane %v77_v19, %v645_v11  ;;  %v114_v30 = vrot.slane %v104_v20, %v651_v14  ;;  %v160_v35 = vrot.slane %v649_v13, %v673_v25  ;;  %v205_v18 = vld [vmem:[%s738_s5] sm:$0xff]  ;;  %s557_s5 = smov 2  }
  0x19   :  { %v118_v31 = vrot.slane %v108_v21, %v651_v14  ;;  %v140_v32 = vrot.slane %v130_v22, %v655_v16  ;;  %v144_v33 = vrot.slane %v134_v23, %v655_v16  ;;  %v166_v46 = vrot.slane %v156_v34, %v671_v24  ;;  %v194_v22 = vld [vmem:[%s737_s4] sm:$0xff]  ;;  %s556_s4 = smov 4  }
  0x1a   :  { %489 = vset.pattern.permute.xlu0 %v555_v8  ;;  %v170_v47 = vrot.slane %v160_v35, %v671_v24 }
  0x1b   :  { %150 = vperm.xlu0 %489, %v56_v4   ;;  %490 = vset.pattern.permute.xlu1 %v552_v2 }
  0x1f   :  { %491 = vset.pattern.permute.xlu0 %v552_v2 }
  0x43   :  { %s471_s0 = spop %470 }
  0x44   :  { %v177_v55 = vstv %s471_s0 }
  0x8d   :  { %v67_v28 = vpop.permute.xlu0 %66  ;;  %v99_v29 = vpop.permute.xlu1 %98 }
  0x8e   :  { %v88_v36 = vmul.f32 %v83_v26, %v67_v28  ;;  %v89_v37 = vmul.f32 %v87_v27, %v67_v28  ;;  %v119_v39 = vmul.f32 %v114_v30, %v99_v29  ;;  %v120_v40 = vmul.f32 %v118_v31, %v99_v29  ;;  %v57_v27 = vld [vmem:[%s739_s6] sm:$0xff] }
  0x8f   :  { %v61_v28 = vld [vmem:[#allocation3] sm:$0x1] }
  0x90   :  { %472 = vpush %v61_v28 }
  0x91   :  { %v93_v38 = vpop.permute.xlu0 %92 }
  0x92   :  { %v95_v41 = vadd.f32 %v93_v38, %v88_v36  ;;  %v96_v42 = vadd.f32 %v93_v38, %v89_v37  ;;  %v125_v43 = vpop.permute.xlu1 %124  ;;  %v214_v37 = vand.u32 127, %v70_v9 }
  0x93   :  { %v145_v44 = vmul.f32 %v140_v32, %v125_v43  ;;  %v146_v45 = vmul.f32 %v144_v33, %v125_v43 }
  0x94   :  { %v121_v48 = vadd.f32 %v119_v39, %v95_v41  ;;  %v122_v49 = vadd.f32 %v120_v40, %v96_v42  ;;  %v215_v39 = vadd.s32 128, %v214_v37  ;;  %vm229_vm2 = vcmp.lt.s32.totalorder %v214_v37, 4 }
  0x95   :  { %vm232_vm3 = vcmp.ge.s32.totalorder %v214_v37, 4  ;;  %vm248_vm5 = vcmp.lt.s32.totalorder %v214_v37, 2  ;;  %vm251_vm6 = vcmp.ge.s32.totalorder %v214_v37, 2 }
  0x96   :  { %v147_v50 = vadd.f32 %v145_v44, %v121_v48  ;;  %v148_v51 = vadd.f32 %v146_v45, %v122_v49  ;;  %v151_v52 = vpop.permute.xlu0 %150 }
  0x97   :  { %v171_v53 = vmul.f32 %v166_v46, %v151_v52  ;;  %v172_v54 = vmul.f32 %v170_v47, %v151_v52 }
  0x99   :  { %v173_v56 = vadd.f32 %v171_v53, %v147_v50  ;;  %v174_v57 = vadd.f32 %v172_v54, %v148_v51 }
  0x9b   :  { %v178_v58 = vmul.f32 %v177_v55, %v173_v56  ;;  %v179_v59 = vmul.f32 %v177_v55, %v174_v57  ;;  %vm175_vm0 = vcmp.ge.f32.partialorder %v173_v56, 0.0  ;;  %vm176_vm1 = vcmp.ge.f32.partialorder %v174_v57, 0.0 }
  0x9d   :  { %v180_v60 = vsel %vm175_vm0, %v173_v56, %v178_v58  ;;  %v181_v61 = vsel %vm176_vm1, %v174_v57, %v179_v59 }
  0x9e   :  { %v182_v62 = vadd.f32 %v181_v61, %v180_v60 }
  0xa0   :  { %183 = vadd.xlane.f32.xlu1 %v182_v62 }
  0xc1   :  { %s473_s6 = spop %472 }
  0xc2   :  { %v265_v59 = vstv %s473_s6 }
 0x129   :  { %v184_v63 = vpop.xlane.xlu1 %183 }
 0x12a   :  { %v185_v0 = vmul.f32 0.00390625, %v184_v63 }
 0x12c   :  { %v186_v1 = vsub.f32 %v180_v60, %v185_v0  ;;  %v187_v4 = vsub.f32 %v181_v61, %v185_v0 }
 0x12e   :  { %v188_v5 = vmul.f32 %v186_v1, %v186_v1  ;;  %v189_v6 = vmul.f32 %v187_v4, %v187_v4 }
 0x130   :  { %v190_v10 = vadd.f32 %v189_v6, %v188_v5 }
 0x132   :  { %191 = vadd.xlane.f32.xlu0 %v190_v10 }
 0x148   :  { %208 = vperm.xlu0 %491, %v205_v18  }
 0x1bb   :  { %v192_v19 = vpop.xlane.xlu0 %191 }
 0x1bc   :  { %v193_v20 = vmul.f32 0.00390625, %v192_v19 }
 0x1be   :  { %v195_v21 = vadd.f32 1e-05, %v193_v20 }
 0x1c0   :  { %503 = vrsqrt.f32 %v195_v21 }
 0x1c3   :  { %v209_v30 = vpop.permute.xlu0 %208 }
 0x1cd   :  { %v504_v23 = vpop.eup %503 }
 0x1ce   :  { %v197_v26 = vmul.f32 %v504_v23, %v194_v22  ;;  %v293_v22 = vld [vmem:[%s741_s9] sm:$0xff] }
 0x1cf   :  { %v58_v23 = vld [vmem:[%s742_s10] sm:$0xf] }
 0x1d0   :  { %200 = vperm.xlu1 %490, %v197_v26   ;;  %v558_v26 = vmov 5  }
 0x1d4   :  { %492 = vset.pattern.permute.xlu1 %v554_v7 }
 0x1d5   :  { %220 = vperm.xlu1 %492, %v57_v27  }
 0x1d9   :  { %493 = vset.pattern.permute.xlu1 %v552_v2 }
 0x1da   :  { %237 = vperm.xlu1 %493, %v57_v27  }
 0x1de   :  { %494 = vset.pattern.permute.xlu1 %v553_v3 }
 0x1df   :  { %256 = vperm.xlu1 %494, %v57_v27   ;;  %v559_v27 = vmov 6  }
 0x1e3   :  { %495 = vset.pattern.permute.xlu1 %v552_v2  ;;  %v217_v2 = vand.u32 127, %v215_v39 }
 0x1e5   :  { %vm233_vm4 = vcmp.ge.s32.totalorder %v217_v2, 4  ;;  %vm252_vm7 = vcmp.ge.s32.totalorder %v217_v2, 2 }
 0x24b   :  { %v201_v29 = vpop.permute.xlu1 %200 }
 0x24c   :  { %v203_v31 = vmul.f32 %v201_v29, %v186_v1  ;;  %v204_v32 = vmul.f32 %v201_v29, %v187_v4 }
 0x24e   :  { %v211_v33 = vadd.f32 %v209_v30, %v203_v31  ;;  %v212_v34 = vadd.f32 %v209_v30, %v204_v32  ;;  %v282_v31 = vld [vmem:[%s740_s8] sm:$0xff]  ;;  %s562_s8 = smov [#allocation7]  }
 0x24f   :  { %s461_s10 = sshll.u32 %s562_s8, 4  ;;  %s462_s10 = int_to_ptr.vmem [resolvable:$true] %s461_s10 }
 0x250   :  { %225 = vrot.lane.b32.xlu1 %v211_v33, %s556_s4  ;;  %v221_v35 = vpop.permute.xlu1 %220  ;;  %s527_s18 = scalar_lea.vmem %s462_s10, 128  ;;  %p532_p6 = scmp.lt.s32.totalorder %s462_s10, %s462_s10 }
 0x251   :  { %v223_v9 = vmul.f32 %v221_v35, %v211_v33  ;;  %v224_v50 = vmul.f32 %v221_v35, %v212_v34  ;;  %p528_p5 = scmp.ne.s32.totalorder %s462_s10, %s527_s18  ;;  %p533_p7 = scmp.lt.s32.totalorder %s527_s18, %s527_s18 }
 0x253   :  { %p534_p8 = por %p533_p7, %p532_p6 }
 0x254   :  { %227 = vrot.lane.b32.xlu1 %v212_v34, %s556_s4 }
 0x255   :  { %v238_v36 = vpop.permute.xlu1 %237  ;;  %p535_p9 = pnand %p534_p8, %p528_p5 }
 0x258   :  { %244 = vrot.lane.b32.xlu1 %v211_v33, %s557_s5  ;;  %v561_v33 = vmov 7  }
 0x25a   :  { %v257_v38 = vpop.permute.xlu1 %256 }
 0x25c   :  { %246 = vrot.lane.b32.xlu1 %v212_v34, %s557_s5 }
 0x2c2   :  { %v226_v40 = vpop.permute.xlu1 %225 }
 0x2c6   :  { %v228_v41 = vpop.permute.xlu1 %227 }
 0x2c7   :  { %v230_v42 = vsel %vm229_vm2, %v226_v40, %v228_v41  ;;  %v231_v43 = vsel %vm229_vm2, %v228_v41, %v226_v40 }
 0x2c8   :  { %v234_v44 = vsel %vm232_vm3, %v231_v43, 0.0  ;;  %v235_v45 = vsel %vm233_vm4, %v230_v42, 0.0 }
 0x2c9   :  { %v240_v47 = vmul.f32 %v238_v36, %v234_v44  ;;  %v241_v48 = vmul.f32 %v238_v36, %v235_v45 }
 0x2ca   :  { %v245_v46 = vpop.permute.xlu1 %244 }
 0x2cb   :  { %v242_v55 = vadd.f32 %v240_v47, %v223_v9  ;;  %v243_v56 = vadd.f32 %v241_v48, %v224_v50 }
 0x2ce   :  { %v247_v49 = vpop.permute.xlu1 %246 }
 0x2cf   :  { %v249_v51 = vsel %vm248_vm5, %v245_v46, %v247_v49  ;;  %v250_v52 = vsel %vm248_vm5, %v247_v49, %v245_v46 }
 0x2d0   :  { %v253_v53 = vsel %vm251_vm6, %v250_v52, 0.0  ;;  %v254_v54 = vsel %vm252_vm7, %v249_v51, 0.0 }
 0x2d1   :  { %v259_v57 = vmul.f32 %v257_v38, %v253_v53  ;;  %v260_v58 = vmul.f32 %v257_v38, %v254_v54 }
 0x2d3   :  { %v261_v60 = vadd.f32 %v259_v57, %v242_v55  ;;  %v262_v61 = vadd.f32 %v260_v58, %v243_v56 }
 0x2d5   :  { %v266_v62 = vmul.f32 %v265_v59, %v261_v60  ;;  %v267_v63 = vmul.f32 %v265_v59, %v262_v61  ;;  %vm263_vm8 = vcmp.ge.f32.partialorder %v261_v60, 0.0  ;;  %vm264_vm9 = vcmp.ge.f32.partialorder %v262_v61, 0.0 }
 0x2d7   :  { %v268_v0 = vsel %vm263_vm8, %v261_v60, %v266_v62  ;;  %v269_v1 = vsel %vm264_vm9, %v262_v61, %v267_v63 }
 0x2d8   :  { %v270_v4 = vadd.f32 %v269_v1, %v268_v0 }
 0x2da   :  { %271 = vadd.xlane.f32.xlu1 %v270_v4 }
 0x2eb   :  { %296 = vperm.xlu1 %495, %v293_v22  }
 0x2ef   :  { %303 = vperm.xlu1 %495, %v58_v23  }
 0x2f3   :  { %497 = vset.pattern.permute.xlu1 %v554_v7 }
 0x2f4   :  { %341 = vperm.xlu1 %497, %v58_v23  }
 0x2f8   :  { %498 = vset.pattern.permute.xlu1 %v555_v8  ;;  %v560_v8 = vmov 4  }
 0x2f9   :  { %360 = vperm.xlu1 %498, %v58_v23  }
 0x2fd   :  { %500 = vset.pattern.permute.xlu1 %v558_v26 }
 0x2fe   :  { %398 = vperm.xlu1 %500, %v58_v23  }
 0x302   :  { %501 = vset.pattern.permute.xlu1 %v559_v27 }
 0x303   :  { %417 = vperm.xlu1 %501, %v58_v23  }
 0x363   :  { %v272_v5 = vpop.xlane.xlu1 %271 }
 0x364   :  { %v273_v6 = vmul.f32 0.00390625, %v272_v5 }
 0x366   :  { %v274_v10 = vsub.f32 %v268_v0, %v273_v6  ;;  %v275_v18 = vsub.f32 %v269_v1, %v273_v6 }
 0x367   :  { %v297_v34 = vpop.permute.xlu1 %296 }
 0x368   :  { %v276_v19 = vmul.f32 %v274_v10, %v274_v10  ;;  %v277_v20 = vmul.f32 %v275_v18, %v275_v18 }
 0x36a   :  { %v278_v21 = vadd.f32 %v277_v20, %v276_v19 }
 0x36b   :  { %v304_v35 = vpop.permute.xlu1 %303 }
 0x36c   :  { %279 = vadd.xlane.f32.xlu0 %v278_v21 }
 0x36f   :  { %v342_v36 = vpop.permute.xlu1 %341 }
 0x374   :  { %v361_v38 = vpop.permute.xlu1 %360 }
 0x379   :  { %v399_v48 = vpop.permute.xlu1 %398 }
 0x37e   :  { %v418_v4 = vpop.permute.xlu1 %417 }
 0x3f5   :  { %v280_v28 = vpop.xlane.xlu0 %279 }
 0x3f6   :  { %v281_v29 = vmul.f32 0.00390625, %v280_v28 }
 0x3f8   :  { %v283_v30 = vadd.f32 1e-05, %v281_v29 }
 0x3fa   :  { %505 = vrsqrt.f32 %v283_v30 }
 0x407   :  { %v506_v32 = vpop.eup %505 }
 0x408   :  { %v285_v7 = vmul.f32 %v506_v32, %v282_v31 }
 0x40a   :  { %288 = vperm.xlu0 %491, %v285_v7  }
 0x40e   :  { %496 = vset.pattern.permute.xlu0 %v553_v3 }
 0x40f   :  { %322 = vperm.xlu0 %496, %v58_v23  }
 0x413   :  { %499 = vset.pattern.permute.xlu0 %v560_v8 }
 0x414   :  { %379 = vperm.xlu0 %499, %v58_v23  }
 0x418   :  { %502 = vset.pattern.permute.xlu0 %v561_v33 }
 0x419   :  { %436 = vperm.xlu0 %502, %v58_v23  }
 0x485   :  { %v289_v37 = vpop.permute.xlu0 %288 }
 0x486   :  { %v291_v39 = vmul.f32 %v289_v37, %v274_v10  ;;  %v292_v40 = vmul.f32 %v289_v37, %v275_v18 }
 0x488   :  { %v299_v2 = vadd.f32 %v297_v34, %v291_v39  ;;  %v300_v41 = vadd.f32 %v297_v34, %v292_v40 }
 0x48a   :  { %v323_v42 = vpop.permute.xlu0 %322  ;;  %v309_v43 = vrot.slane %v299_v2, %v645_v11  ;;  %v313_v3 = vrot.slane %v300_v41, %v645_v11  ;;  %v328_v44 = vrot.slane %v299_v2, %v651_v14  ;;  %v332_v45 = vrot.slane %v300_v41, %v651_v14 }
 0x48b   :  { %v347_v46 = vrot.slane %v299_v2, %v655_v16  ;;  %v351_v47 = vrot.slane %v300_v41, %v655_v16  ;;  %v404_v55 = vrot.slane %v299_v2, %v653_v15  ;;  %v408_v11 = vrot.slane %v300_v41, %v653_v15 }
 0x48c   :  { %v314_v49 = vmul.f32 %v309_v43, %v304_v35  ;;  %v315_v9 = vmul.f32 %v313_v3, %v304_v35  ;;  %v333_v50 = vmul.f32 %v328_v44, %v323_v42  ;;  %v334_v51 = vmul.f32 %v332_v45, %v323_v42 }
 0x48d   :  { %v352_v53 = vmul.f32 %v347_v46, %v342_v36  ;;  %v353_v54 = vmul.f32 %v351_v47, %v342_v36  ;;  %v366_v57 = vrot.slane %v299_v2, %v671_v24  ;;  %v370_v14 = vrot.slane %v300_v41, %v671_v24 }
 0x48e   :  { %v318_v52 = vcombine.low %v314_v49, %v315_v9  ;;  %v337_v16 = vcombine.low %v333_v50, %v334_v51  ;;  %v423_v59 = vrot.slane %v299_v2, %v657_v17  ;;  %v385_v60 = vrot.slane %v299_v2, %v647_v12 }
 0x48f   :  { %v380_v56 = vpop.permute.xlu0 %379  ;;  %v427_v61 = vrot.slane %v300_v41, %v657_v17  ;;  %v371_v62 = vmul.f32 %v366_v57, %v361_v38  ;;  %v372_v63 = vmul.f32 %v370_v14, %v361_v38  ;;  %v389_v0 = vrot.slane %v300_v41, %v647_v12 }
 0x490   :  { %v320_v58 = vadd.f32 %v318_v52, %v649_v13  ;;  %v356_v15 = vcombine.low %v352_v53, %v353_v54  ;;  %v390_v5 = vmul.f32 %v385_v60, %v380_v56  ;;  %v409_v10 = vmul.f32 %v404_v55, %v399_v48 }
 0x491   :  { %v391_v6 = vmul.f32 %v389_v0, %v380_v56  ;;  %v410_v24 = vmul.f32 %v408_v11, %v399_v48  ;;  %v375_v13 = vcombine.low %v371_v62, %v372_v63  ;;  %v428_v19 = vmul.f32 %v423_v59, %v418_v4 }
 0x492   :  { %v339_v1 = vadd.f32 %v337_v16, %v320_v58  ;;  %v429_v20 = vmul.f32 %v427_v61, %v418_v4  ;;  %v442_v17 = vrot.slane %v299_v2, %v673_v25  ;;  %v446_v26 = vrot.slane %v300_v41, %v673_v25 }
 0x493   :  { %v394_v23 = vcombine.low %v390_v5, %v391_v6  ;;  %v413_v27 = vcombine.low %v409_v10, %v410_v24 }
 0x494   :  { %v358_v18 = vadd.f32 %v356_v15, %v339_v1  ;;  %v437_v21 = vpop.permute.xlu0 %436  ;;  %v432_v30 = vcombine.low %v428_v19, %v429_v20 }
 0x495   :  { %v447_v28 = vmul.f32 %v442_v17, %v437_v21  ;;  %v448_v29 = vmul.f32 %v446_v26, %v437_v21 }
 0x496   :  { %v377_v22 = vadd.f32 %v375_v13, %v358_v18 }
 0x497   :  { %v451_v32 = vcombine.low %v447_v28, %v448_v29 }
 0x498   :  { %v396_v12 = vadd.f32 %v394_v23, %v377_v22 }
 0x49a   :  { %v415_v31 = vadd.f32 %v413_v27, %v396_v12 }
 0x49c   :  { %v434_v7 = vadd.f32 %v432_v30, %v415_v31 }
 0x49e   :  { %v453_v8 = vadd.f32 %v451_v32, %v434_v7 }
 0x4a0   :  { %454 = vst [vmem:[#allocation7] sm:$0xff] %v453_v8 }
 0x4a1   :  { %538 = shalt.err (!%p535_p9)
}
 0x4a2   :  { %464 = dma.vmem_to_hbm [thread:$0]  %s462_s10, 128, %s743_s11, [#allocation6]  }
 0x4a3   :  { %549 = dma.done.wait [#allocation6], 128  }
 0x4a4   :  { %550 = vsyncadd [#allocation6], 4294967168 }
 0x4a5   :  { %468 = vsyncpa [#allocation5], 1 }
 0x4a6   :  { %469 = vsyncpa [#allocation6], 1 }

</bundles_post_ra>
